<compile_context>
chip_gen: v6e
topology: v6e:2x2x1
jax: 0.10.0
libtpu: 0.0.40
codegen_flags: <defaults>
</compile_context>

<pallas_src>
import jax
import jax.numpy as jnp
from jax.experimental import pallas as pl
from jax.experimental.pallas import tpu as pltpu


def _mean_max_pool_kernel(h_ref, m_ref, o_ref, sum_sc, max_sc, cnt_sc):
    s = pl.program_id(1)

    @pl.when(s == 0)
    def _init():
        sum_sc[...] = jnp.zeros_like(sum_sc)
        max_sc[...] = jnp.full_like(max_sc, -1e9)  # matches PyTorch's -1e9 fill
        cnt_sc[...] = jnp.zeros_like(cnt_sc)

    h = h_ref[...].astype(jnp.float32)        # (tb, ts, H)  cast once after load
    m = m_ref[...].astype(jnp.float32)        # (tb, ts)     lane-dense mask tile

    m3 = m[:, :, None]                        # (tb, ts, 1)  tiny in-kernel relayout
    valid = m3 != 0.0

    # Masked sum / max over this S-tile, accumulated in f32 scratch.
    sum_sc[...] += jnp.sum(jnp.where(valid, h, 0.0), axis=1)                       # (tb, H)
    max_sc[...] = jnp.maximum(
        max_sc[...], jnp.max(jnp.where(valid, h, jnp.float32(-1e9)), axis=1))      # (tb, H)
    cnt_sc[...] += jnp.sum(m, axis=1, keepdims=True)                               # (tb, 1)

    @pl.when(s == pl.num_programs(1) - 1)
    def _finalize():
        denom = jnp.maximum(cnt_sc[...], 1e-9)                 # clamp(min=1e-9)
        o_ref[:, 0, :] = (sum_sc[...] / denom).astype(o_ref.dtype)   # mean half
        o_ref[:, 1, :] = max_sc[...].astype(o_ref.dtype)             # max half


def _largest_divisor(n, cap, multiple_of=1):
    cap = max(1, min(n, cap))
    for d in range(cap, 0, -1):
        if n % d == 0 and d % multiple_of == 0:
            return d
    return None


def hidden2_mean_max_pooling(hidden_states, attention_mask):
    """hidden_states: list/tuple of (B, S, H) arrays; attention_mask: (B, S)."""
    # Only layer [-2] is consumed: index the list directly instead of stacking all layers.
    hidden_state = hidden_states[-2]                        # (B, S, H), native dtype
    B, S, H = hidden_state.shape
    mask = attention_mask.astype(jnp.float32)               # (B, S), lane-dense
    itemsize = jnp.dtype(hidden_state.dtype).itemsize

    # ---- tile selection ----
    # Batch tile: must be a multiple of 8 or the full B (mask block constraint).
    tb = 8 if (B % 8 == 0) else B
    # Sequence tile: largest divisor of S that is a multiple of 128 and keeps one hidden
    # block under ~8 MiB (so 2x double-buffering stays well inside scoped VMEM on v7x/v5e).
    budget = 8 * 1024 * 1024
    ts_cap = max(1, budget // max(1, tb * H * itemsize))
    ts = _largest_divisor(S, ts_cap, multiple_of=128)
    if ts is None:
        # TODO(synk): for very large S with no multiple-of-128 divisor this falls back to a
        # full-S block; fine for typical transformer sequence lengths.
        ts = S

    grid = (B // tb, S // ts)

    # Explicit VMEM budget (double-buffered inputs + resident output + scratch), >= 32 MiB.
    h_blk = tb * ts * H * itemsize
    m_blk = tb * ts * 4
    o_blk = tb * 2 * H * 4
    scratch = 2 * tb * H * 4 + tb * 4
    need = 2 * (h_blk + m_blk) + 2 * o_blk + scratch
    vmem_limit = int(min(100 * 2**20, max(32 * 2**20, 2 * need)))

    out = pl.pallas_call(
        _mean_max_pool_kernel,
        out_shape=jax.ShapeDtypeStruct((B, 2, H), jnp.float32),
        grid_spec=pltpu.PrefetchScalarGridSpec(
            num_scalar_prefetch=0,
            grid=grid,
            in_specs=[
                pl.BlockSpec((tb, ts, H), lambda b, s: (b, s, 0)),   # hidden (native dtype)
                pl.BlockSpec((tb, ts), lambda b, s: (b, s)),         # mask, lane-dense
            ],
            out_specs=pl.BlockSpec((tb, 2, H), lambda b, s: (b, 0, 0)),
            scratch_shapes=[
                pltpu.VMEM((tb, H), jnp.float32),   # running masked sum
                pltpu.VMEM((tb, H), jnp.float32),   # running masked max
                pltpu.VMEM((tb, 1), jnp.float32),   # running mask count
            ],
        ),
        compiler_params=pltpu.CompilerParams(
            dimension_semantics=("parallel", "arbitrary"),
            vmem_limit_bytes=vmem_limit,
        ),
    )(hidden_state, mask)

    return out.reshape(B, 2 * H)


def _reference(hidden_states, attention_mask):
    hidden_state = hidden_states[-2].astype(jnp.float32)
    mask = attention_mask.astype(jnp.float32)[..., None]
    sum_emb = jnp.sum(hidden_state * mask, axis=1)
    sum_mask = jnp.clip(jnp.sum(mask, axis=1), 1e-9)
    mean_emb = sum_emb / sum_mask
    h_masked = jnp.where(mask == 0.0, -1e9, hidden_state)
    max_emb = jnp.max(h_masked, axis=1)
    return jnp.concatenate([mean_emb, max_emb], axis=-1)


if __name__ == "__main__":
    B, S, H, L = 2, 8, 32, 3  # batch, seq, hidden, num hidden-state layers

    key = jax.random.PRNGKey(0)
    keys = jax.random.split(key, L)
    # Simulated transformer hidden states (the module only consumes layer [-2]).
    hidden_states = [jax.random.normal(k, (B, S, H), dtype=jnp.float32) for k in keys]
    # Attention mask: first example fully valid, second has padding.
    attention_mask = jnp.array(
        [[1, 1, 1, 1, 1, 1, 1, 1],
         [1, 1, 1, 1, 1, 0, 0, 0]], dtype=jnp.int32)

    # f32 path
    out = hidden2_mean_max_pooling(hidden_states, attention_mask)
    out = jax.block_until_ready(out)
    ref = _reference(hidden_states, attention_mask)
    assert out.shape == (B, 2 * H)
    assert jnp.allclose(out, ref, atol=1e-5, rtol=1e-5)

    # bf16 path: bf16 stays bf16 through the DMA, f32 accumulation in-kernel.
    hs_bf16 = [h.astype(jnp.bfloat16) for h in hidden_states]
    out_bf = jax.block_until_ready(hidden2_mean_max_pooling(hs_bf16, attention_mask))
    ref_bf = _reference(hs_bf16, attention_mask)
    assert out_bf.shape == (B, 2 * H)
    assert jnp.allclose(out_bf, ref_bf, atol=2e-2, rtol=2e-2)

    print("KERNEL_OK")
</pallas_src>

<mosaic_0001>
module attributes {stable_mosaic.version = 11 : i64} {
  func.func @_mean_max_pool_kernel(%arg0: i32, %arg1: i32, %arg2: memref<2x8x32xf32, #tpu.memory_space<vmem>>, %arg3: memref<2x8xf32, #tpu.memory_space<vmem>>, %arg4: memref<2x2x32xf32, #tpu.memory_space<vmem>>, %arg5: memref<2x32xf32, #tpu.memory_space<vmem>>, %arg6: memref<2x32xf32, #tpu.memory_space<vmem>>, %arg7: memref<2x1xf32, #tpu.memory_space<vmem>>) attributes {dimension_semantics = [#tpu.dimension_semantics<parallel>, #tpu.dimension_semantics<arbitrary>], iteration_bounds = array<i64: 1, 1>, scalar_prefetch = 0 : i64, scratch_operands = 3 : i64, tpu.core_type = #tpu.core_type<tc>, window_params = [{transform_indices = @transform_0, window_bounds = array<i64: 2, 8, 32>}, {transform_indices = @transform_1, window_bounds = array<i64: 2, 8>}, {transform_indices = @transform_2, window_bounds = array<i64: 2, 2, 32>}]} {
    %c0_i32 = arith.constant 0 : i32
    %0 = arith.cmpi eq, %arg1, %c0_i32 : i32
    %1 = arith.extui %0 : i1 to i32
    %c0_i32_0 = arith.constant 0 : i32
    %2 = arith.cmpi ne, %1, %c0_i32_0 : i32
    scf.if %2 {
      %cst_24 = arith.constant 0.000000e+00 : f32
      %32 = vector.broadcast %cst_24 : f32 to vector<2x32xf32>
      %c0_25 = arith.constant 0 : index
      %c0_26 = arith.constant 0 : index
      %33 = vector.load %arg5[%c0_25, %c0_26] : memref<2x32xf32, #tpu.memory_space<vmem>>, vector<2x32xf32>
      tpu.vector_store %arg5[%c0_25, %c0_26], %32 {strides = array<i32>} : memref<2x32xf32, #tpu.memory_space<vmem>>, vector<2x32xf32>,
      %cst_27 = arith.constant -1.000000e+09 : f32
      %34 = vector.broadcast %cst_27 : f32 to vector<2x32xf32>
      %c0_28 = arith.constant 0 : index
      %c0_29 = arith.constant 0 : index
      %35 = vector.load %arg6[%c0_28, %c0_29] : memref<2x32xf32, #tpu.memory_space<vmem>>, vector<2x32xf32>
      tpu.vector_store %arg6[%c0_28, %c0_29], %34 {strides = array<i32>} : memref<2x32xf32, #tpu.memory_space<vmem>>, vector<2x32xf32>,
      %cst_30 = arith.constant 0.000000e+00 : f32
      %36 = vector.broadcast %cst_30 : f32 to vector<2x1xf32>
      %c0_31 = arith.constant 0 : index
      %c0_32 = arith.constant 0 : index
      %37 = vector.load %arg7[%c0_31, %c0_32] : memref<2x1xf32, #tpu.memory_space<vmem>>, vector<2x1xf32>
      tpu.vector_store %arg7[%c0_31, %c0_32], %36 {strides = array<i32>} : memref<2x1xf32, #tpu.memory_space<vmem>>, vector<2x1xf32>,
    } else {
    }
    %c0 = arith.constant 0 : index
    %c0_1 = arith.constant 0 : index
    %c0_2 = arith.constant 0 : index
    %3 = vector.load %arg2[%c0, %c0_1, %c0_2] : memref<2x8x32xf32, #tpu.memory_space<vmem>>, vector<2x8x32xf32>
    %c0_3 = arith.constant 0 : index
    %c0_4 = arith.constant 0 : index
    %4 = vector.load %arg3[%c0_3, %c0_4] : memref<2x8xf32, #tpu.memory_space<vmem>>, vector<2x8xf32>
    %5 = vector.shape_cast %4 : vector<2x8xf32> to vector<2x8x1xf32>
    %cst = arith.constant 0.000000e+00 : f32
    %6 = vector.broadcast %cst : f32 to vector<2x8x1xf32>
    %7 = arith.cmpf one, %5, %6 : vector<2x8x1xf32>
    %c0_5 = arith.constant 0 : index
    %c0_6 = arith.constant 0 : index
    %8 = vector.load %arg5[%c0_5, %c0_6] : memref<2x32xf32, #tpu.memory_space<vmem>>, vector<2x32xf32>
    %cst_7 = arith.constant 0.000000e+00 : f32
    %9 = vector.shape_cast %7 : vector<2x8x1xi1> to vector<2x8x1xi1>
    %10 = vector.broadcast %9 : vector<2x8x1xi1> to vector<2x8x32xi1>
    %11 = vector.broadcast %cst_7 : f32 to vector<2x8x32xf32>
    %12 = arith.select %10, %3, %11 : vector<2x8x32xi1>, vector<2x8x32xf32>
    %cst_8 = arith.constant dense<0.000000e+00> : vector<2x32xf32>
    %13 = vector.multi_reduction <add>, %12, %cst_8 [1] : vector<2x8x32xf32> to vector<2x32xf32>
    %14 = arith.addf %8, %13 : vector<2x32xf32>
    %c0_9 = arith.constant 0 : index
    %c0_10 = arith.constant 0 : index
    %15 = vector.load %arg5[%c0_9, %c0_10] : memref<2x32xf32, #tpu.memory_space<vmem>>, vector<2x32xf32>
    tpu.vector_store %arg5[%c0_9, %c0_10], %14 {strides = array<i32>} : memref<2x32xf32, #tpu.memory_space<vmem>>, vector<2x32xf32>,
    %c0_11 = arith.constant 0 : index
    %c0_12 = arith.constant 0 : index
    %16 = vector.load %arg6[%c0_11, %c0_12] : memref<2x32xf32, #tpu.memory_space<vmem>>, vector<2x32xf32>
    %cst_13 = arith.constant -1.000000e+09 : f32
    %17 = vector.shape_cast %7 : vector<2x8x1xi1> to vector<2x8x1xi1>
    %18 = vector.broadcast %17 : vector<2x8x1xi1> to vector<2x8x32xi1>
    %19 = vector.broadcast %cst_13 : f32 to vector<2x8x32xf32>
    %20 = arith.select %18, %3, %19 : vector<2x8x32xi1>, vector<2x8x32xf32>
    %cst_14 = arith.constant dense<0xFF800000> : vector<2x32xf32>
    %21 = vector.multi_reduction <maximumf>, %20, %cst_14 [1] : vector<2x8x32xf32> to vector<2x32xf32>
    %22 = arith.maximumf %16, %21 : vector<2x32xf32>
    %c0_15 = arith.constant 0 : index
    %c0_16 = arith.constant 0 : index
    %23 = vector.load %arg6[%c0_15, %c0_16] : memref<2x32xf32, #tpu.memory_space<vmem>>, vector<2x32xf32>
    tpu.vector_store %arg6[%c0_15, %c0_16], %22 {strides = array<i32>} : memref<2x32xf32, #tpu.memory_space<vmem>>, vector<2x32xf32>,
    %c0_17 = arith.constant 0 : index
    %c0_18 = arith.constant 0 : index
    %24 = vector.load %arg7[%c0_17, %c0_18] : memref<2x1xf32, #tpu.memory_space<vmem>>, vector<2x1xf32>
    %cst_19 = arith.constant dense<0.000000e+00> : vector<2xf32>
    %25 = vector.multi_reduction <add>, %4, %cst_19 [1] : vector<2x8xf32> to vector<2xf32>
    %26 = vector.shape_cast %25 : vector<2xf32> to vector<2x1xf32>
    %27 = arith.addf %24, %26 : vector<2x1xf32>
    %c0_20 = arith.constant 0 : index
    %c0_21 = arith.constant 0 : index
    %28 = vector.load %arg7[%c0_20, %c0_21] : memref<2x1xf32, #tpu.memory_space<vmem>>, vector<2x1xf32>
    tpu.vector_store %arg7[%c0_20, %c0_21], %27 {strides = array<i32>} : memref<2x1xf32, #tpu.memory_space<vmem>>, vector<2x1xf32>,
    %c0_i32_22 = arith.constant 0 : i32
    %29 = arith.cmpi eq, %arg1, %c0_i32_22 : i32
    %30 = arith.extui %29 : i1 to i32
    %c0_i32_23 = arith.constant 0 : i32
    %31 = arith.cmpi ne, %30, %c0_i32_23 : i32
    scf.if %31 {
      %c0_24 = arith.constant 0 : index
      %c0_25 = arith.constant 0 : index
      %32 = vector.load %arg7[%c0_24, %c0_25] : memref<2x1xf32, #tpu.memory_space<vmem>>, vector<2x1xf32>
      %cst_26 = arith.constant 9.99999971E-10 : f32
      %33 = vector.broadcast %cst_26 : f32 to vector<2x1xf32>
      %34 = arith.maximumf %32, %33 : vector<2x1xf32>
      %c0_27 = arith.constant 0 : index
      %c0_28 = arith.constant 0 : index
      %35 = vector.load %arg5[%c0_27, %c0_28] : memref<2x32xf32, #tpu.memory_space<vmem>>, vector<2x32xf32>
      %36 = vector.broadcast %34 : vector<2x1xf32> to vector<2x32xf32>
      %37 = arith.divf %35, %36 : vector<2x32xf32>
      %c0_29 = arith.constant 0 : index
      %c0_30 = arith.constant 0 : index
      %c0_31 = arith.constant 0 : index
      %38 = vector.load %arg4[%c0_29, %c0_30, %c0_31] : memref<2x2x32xf32, #tpu.memory_space<vmem>>, vector<2x1x32xf32>
      %39 = vector.shape_cast %38 : vector<2x1x32xf32> to vector<2x32xf32>
      %40 = vector.shape_cast %37 : vector<2x32xf32> to vector<2x1x32xf32>
      tpu.vector_store %arg4[%c0_29, %c0_30, %c0_31], %40 {strides = array<i32>} : memref<2x2x32xf32, #tpu.memory_space<vmem>>, vector<2x1x32xf32>,
      %c0_32 = arith.constant 0 : index
      %c0_33 = arith.constant 0 : index
      %41 = vector.load %arg6[%c0_32, %c0_33] : memref<2x32xf32, #tpu.memory_space<vmem>>, vector<2x32xf32>
      %c0_34 = arith.constant 0 : index
      %c1 = arith.constant 1 : index
      %c0_35 = arith.constant 0 : index
      %42 = vector.load %arg4[%c0_34, %c1, %c0_35] : memref<2x2x32xf32, #tpu.memory_space<vmem>>, vector<2x1x32xf32>
      %43 = vector.shape_cast %42 : vector<2x1x32xf32> to vector<2x32xf32>
      %44 = vector.shape_cast %41 : vector<2x32xf32> to vector<2x1x32xf32>
      tpu.vector_store %arg4[%c0_34, %c1, %c0_35], %44 {strides = array<i32>} : memref<2x2x32xf32, #tpu.memory_space<vmem>>, vector<2x1x32xf32>,
    } else {
    }
    return
  }
  func.func @transform_0(%arg0: i32, %arg1: i32) -> (i32, i32, i32) {
    %c0_i32 = arith.constant 0 : i32
    %c0_i32_0 = arith.constant 0 : i32
    return %arg0, %arg1, %c0_i32 : i32, i32, i32
  }
  func.func @transform_1(%arg0: i32, %arg1: i32) -> (i32, i32) {
    %c0_i32 = arith.constant 0 : i32
    return %arg0, %arg1 : i32, i32
  }
  func.func @transform_2(%arg0: i32, %arg1: i32) -> (i32, i32, i32) {
    %c0_i32 = arith.constant 0 : i32
    %c0_i32_0 = arith.constant 0 : i32
    %c0_i32_1 = arith.constant 0 : i32
    return %arg0, %c0_i32, %c0_i32_0 : i32, i32, i32
  }
}

</mosaic_0001>

<bundles_post_ra>
// kernel: tpu_custom_call.1
= control target key start
LH: loop header
LB: loop body
LE: loop exit
PB: predicated region body
PF: predicated region fallthrough
CT: control target
= control target key end

     0   :  { %7 = vsyncpa [#allocation6], 0  ;;  %s350_s0 = inlined_call_operand.hbm [shape: f32[2,8,32], index: 0, kind: input, shape index: {}]   ;;  %s351_s1 = inlined_call_operand.hbm [shape: f32[2,8], index: 1, kind: input, shape index: {}]   ;;  %s352_s2 = inlined_call_operand.hbm [shape: f32[2,2,32], index: 2, kind: output, shape index: {}]  }
   0x1   :  { %8 = vsyncpa [#allocation9], 0 }
   0x2   :  { %9 = vsyncpa [#allocation7], 0  ;;  %s296_s9 = smov [#allocation5]  }
   0x3   :  { %s15_s10 = sshll.u32 %s296_s9, 4  ;;  %s16_s10 = int_to_ptr.vmem [resolvable:$true] %s15_s10 }
   0x4   :  { %s238_s11 = scalar_lea.vmem %s16_s10, 256  ;;  %p243_p1 = scmp.lt.s32.totalorder %s16_s10, %s16_s10 }
   0x5   :  { %p239_p0 = scmp.ne.s32.totalorder %s16_s10, %s238_s11  ;;  %p244_p2 = scmp.lt.s32.totalorder %s238_s11, %s238_s11 }
   0x7   :  { %p245_p3 = por %p244_p2, %p243_p1 }
   0x9   :  { %p246_p4 = pnand %p245_p3, %p239_p0 }
   0xb   :  { %249 = shalt.err (!%p246_p4)
}
   0xc   :  { %s297_s12 = smov 128   ;;  %s298_s13 = smov 8  }
   0xd   :  { %21 = dma.hbm_to_vmem [thread:$0]  %s350_s0, 256, %s16_s10, [#allocation6], %s297_s12, %s297_s12, %s298_s13  }
   0xe   :  { %s299_s16 = smov [#allocation8]  }
   0xf   :  { %s28_s17 = sshll.u32 %s299_s16, 4  ;;  %s29_s17 = int_to_ptr.vmem [resolvable:$true] %s28_s17 }
  0x10   :  { %s258_s18 = scalar_lea.vmem %s29_s17, 32  ;;  %p263_p6 = scmp.lt.s32.totalorder %s29_s17, %s29_s17 }
  0x11   :  { %p259_p5 = scmp.ne.s32.totalorder %s29_s17, %s258_s18  ;;  %p264_p7 = scmp.lt.s32.totalorder %s258_s18, %s258_s18 }
  0x13   :  { %p265_p8 = por %p264_p7, %p263_p6 }
  0x15   :  { %p266_p9 = pnand %p265_p8, %p259_p5 }
  0x17   :  { %269 = shalt.err (!%p266_p9)
}
  0x18   :  { %31 = dma.hbm_to_vmem [thread:$0]  %s351_s1, 32, %s29_s17, [#allocation9]  }
  0x19   :  { %290 = dma.done.wait [#allocation6], 256  }
  0x1a   :  { %291 = vsyncadd [#allocation6], 4294967040 }
  0x1b   :  { %292 = dma.done.wait [#allocation9], 32  }
  0x1c   :  { %293 = vsyncadd [#allocation9], 4294967264  ;;  %vm42_vm0 = vcmask 254976   ;;  %vm45_vm1 = vcmask 1024   ;;  %v300_v0 = vmov 0.0   ;;  %vm120_vm2 = vcmask 58368  }
  0x1d   :  { %43 = vst.msk [vmem:[#allocation2] sm:$0x3] %vm42_vm0, %v300_v0  ;;  %v49_v1 = vld [vmem:[#allocation8] sm:$0x3]  ;;  %v50_v3 = vlaneseq  ;;  %v301_v7 = vmov 0   ;;  %v48_v11 = vld [vmem:[#allocation5 + $0x8] sm:$0xff] }
  0x1e   :  { %46 = vst.msk [vmem:[#allocation4] sm:$0x3] %vm45_vm1, %v300_v0  ;;  %v121_v2 = vsel %vm120_vm2, %v49_v1, 0.0  ;;  %226 = vset.pattern.permute.xlu1 %v301_v7  ;;  %227 = vset.pattern.permute.xlu0 %v301_v7  ;;  %v302_v10 = vmov -1e+09   ;;  %vm73_vm3 = vcmask 261120  }
  0x1f   :  { %122 = vadd.xlane.f32.xlu0 %v121_v2  ;;  %v330_v4 = vshrl.u32 %v50_v3, 7  ;;  %44 = vst.msk [vmem:[#allocation3] sm:$0x3] %vm42_vm0, %v302_v10  ;;  %v47_v24 = vld [vmem:[#allocation5] sm:$0xff]  ;;  %vm90_vm6 = vcmask 1041409   ;;  %vm165_vm7 = vcmask 253952  }
  0x20   :  { %v303_v54 = vmov 1966171168   ;;  %s304_s0 = smov [#allocation10]  }
  0x21   :  { %v59_v5 = vsub.s32 1, %v330_v4  ;;  %v52_v8 = vsub.s32 0, %v330_v4  ;;  %v142_v55 = vunpack.c.l.s4 %v303_v54  ;;  %s201_s1 = sshll.u32 %s304_s0, 4  ;;  %s202_s1 = int_to_ptr.vmem [resolvable:$true] %s201_s1 }
  0x22   :  { %s270_s21 = scalar_lea.vmem %s202_s1, 64  ;;  %p275_p11 = scmp.lt.s32.totalorder %s202_s1, %s202_s1 }
  0x23   :  { %v60_v6 = vrot.slane %v49_v1, %v59_v5  ;;  %v53_v9 = vrot.slane %v49_v1, %v52_v8  ;;  %v143_v60 = vunpack.c.0.s8 %v142_v55  ;;  %p271_p10 = scmp.ne.s32.totalorder %s202_s1, %s270_s21  ;;  %p276_p12 = scmp.lt.s32.totalorder %s270_s21, %s270_s21 }
  0x24   :  { %v66_v50 = vld [vmem:[#allocation2] sm:$0x3] }
  0x25   :  { %62 = vbcast.lane.b32.xlu1 %v60_v6, 256  ;;  %v119_v19 = vld [vmem:[#allocation4] sm:$0x3]  ;;  %v146_v61 = vsub.s32 %v143_v60, %v330_v4  ;;  %p277_p13 = por %p276_p12, %p275_p11 }
  0x26   :  { %v96_v52 = vld [vmem:[#allocation3] sm:$0x3] }
  0x27   :  { %p278_p0 = pnand %p277_p13, %p271_p10 }
  0x35   :  { %55 = vbcast.lane.b32.xlu0 %v53_v9, 256 }
  0x97   :  { %v63_v12 = vpop.permute.xlu1 %62 }
  0x98   :  { %vm65_vm4 = vcmp.ne.f32.partialorder %v63_v12, 0.0 }
  0x99   :  { %v72_v13 = vsel %vm65_vm4, %v48_v11, 0.0  ;;  %v98_v14 = vsel %vm65_vm4, %v48_v11, -1e+09 }
  0x9a   :  { %v81_v15 = vsel %vm73_vm3, %v72_v13, 0.0  ;;  %v106_v16 = vsel %vm73_vm3, %v98_v14, -inf }
  0x9b   :  { %v82_v17 = vrot.slane %v81_v15, 4  ;;  %v107_v18 = vrot.slane %v106_v16, 4 }
  0x9d   :  { %v83_v21 = vadd.f32 %v82_v17, %v81_v15  ;;  %v108_v22 = vmax.f32 %v106_v16, %v107_v18 }
  0x9f   :  { %v84_v25 = vrot.slane %v83_v21, 2  ;;  %v109_v26 = vrot.slane %v108_v22, 2 }
  0xa1   :  { %v85_v32 = vadd.f32 %v84_v25, %v83_v21  ;;  %v110_v33 = vmax.f32 %v108_v22, %v109_v26 }
  0xa3   :  { %v86_v40 = vrot.slane %v85_v32, 1  ;;  %v111_v41 = vrot.slane %v110_v33, 1 }
  0xa5   :  { %v87_v46 = vadd.f32 %v86_v40, %v85_v32  ;;  %v112_v47 = vmax.f32 %v110_v33, %v111_v41 }
  0xa8   :  { %v123_v20 = vpop.xlane.xlu0 %122 }
  0xa9   :  { %v124_v23 = vadd.f32 %v123_v20, %v119_v19 }
  0xab   :  { %126 = vst.msk [vmem:[#allocation4] sm:$0x3] %vm45_vm1, %v124_v23 }
  0xac   :  { %v56_v27 = vpop.permute.xlu0 %55 }
  0xad   :  { %vm64_vm5 = vcmp.ne.f32.partialorder %v56_v27, 0.0 }
  0xae   :  { %v71_v28 = vsel %vm64_vm5, %v47_v24, 0.0  ;;  %v97_v29 = vsel %vm64_vm5, %v47_v24, -1e+09 }
  0xaf   :  { %v74_v30 = vsel %vm73_vm3, %v71_v28, 0.0  ;;  %v99_v31 = vsel %vm73_vm3, %v97_v29, -inf }
  0xb0   :  { %v75_v34 = vrot.slane %v74_v30, 4  ;;  %v100_v35 = vrot.slane %v99_v31, 4 }
  0xb2   :  { %v130_v36 = vld [vmem:[#allocation4] sm:$0x3]  ;;  %v76_v37 = vadd.f32 %v75_v34, %v74_v30  ;;  %v101_v38 = vmax.f32 %v99_v31, %v100_v35 }
  0xb3   :  { %v131_v39 = vmax.f32 %v130_v36, 1e-09 }
  0xb4   :  { %v77_v42 = vrot.slane %v76_v37, 2  ;;  %v102_v43 = vrot.slane %v101_v38, 2 }
  0xb5   :  { %135 = vperm.xlu1 %226, %v131_v39  }
  0xb6   :  { %v78_v44 = vadd.f32 %v77_v42, %v76_v37  ;;  %v103_v45 = vmax.f32 %v101_v38, %v102_v43 }
  0xb8   :  { %v79_v48 = vrot.slane %v78_v44, 1  ;;  %v104_v49 = vrot.slane %v103_v45, 1 }
  0xba   :  { %v80_v51 = vadd.f32 %v79_v48, %v78_v44  ;;  %v105_v53 = vmax.f32 %v103_v45, %v104_v49 }
  0xbc   :  { %v91_v56 = vsel %vm90_vm6, %v87_v46, %v80_v51  ;;  %v115_v57 = vsel %vm90_vm6, %v112_v47, %v105_v53 }
  0xbd   :  { %v93_v58 = vadd.f32 %v91_v56, %v66_v50  ;;  %v117_v59 = vmax.f32 %v96_v52, %v115_v57 }
  0xbf   :  { %95 = vst.msk [vmem:[#allocation2] sm:$0x3] %vm42_vm0, %v93_v58  ;;  %118 = vst.msk [vmem:[#allocation3] sm:$0x3] %vm42_vm0, %v117_v59 }
  0xc6   :  { %v214_v62 = vld.sshfl [vmem:[#allocation3] sm:$0x11 pattern:$0x75316420]  ;;  %v132_v5 = vld [vmem:[#allocation2] sm:$0x3] }
  0xc7   :  { %v177_v63 = vcombine.high %v214_v62, %v214_v62  ;;  %v184_v0 = vrot.slane %v214_v62, %v146_v61 }
  0xc9   :  { %v191_v1 = vrot.slane %v177_v63, %v146_v61  ;;  %194 = vst.msk [vmem:[#allocation10 + $0x1] sm:$0x1] %vm165_vm7, %v184_v0 }
  0xcb   :  { %195 = vst.msk [vmem:[#allocation10 + $0x3] sm:$0x1] %vm165_vm7, %v191_v1 }
 0x130   :  { %v136_v2 = vpop.permute.xlu1 %135 }
 0x131   :  { %228 = vrcp.f32 %v136_v2 }
 0x13e   :  { %v229_v3 = vpop.eup %228 }
 0x13f   :  { %v139_v6 = vmul.f32 %v229_v3, %v132_v5 }
 0x141   :  { %v147_v7 = vrot.slane %v139_v6, %v146_v61 }
 0x143   :  { %v148_v8 = vcombine.high %v147_v7, %v147_v7  ;;  %v155_v9 = vrot.slane %v147_v7, %v146_v61 }
 0x145   :  { %v162_v4 = vrot.slane %v148_v8, %v146_v61  ;;  %166 = vst.msk [vmem:[#allocation10] sm:$0x1] %vm165_vm7, %v155_v9 }
 0x147   :  { %167 = vst.msk [vmem:[#allocation10 + $0x2] sm:$0x1] %vm165_vm7, %v162_v4 }
 0x148   :  { %281 = shalt.err (!%p278_p0)
}
 0x149   :  { %s305_s22 = smov 32   ;;  %s306_s23 = smov 2  }
 0x14a   :  { %207 = dma.vmem_to_hbm [thread:$0]  %s202_s1, 64, %s352_s2, [#allocation7], %s305_s22, %s305_s22, %s306_s23  }
 0x14b   :  { %294 = dma.done.wait [#allocation7], 64  }
 0x14c   :  { %295 = vsyncadd [#allocation7], 4294967232 }
 0x14d   :  { %211 = vsyncpa [#allocation6], 1 }
 0x14e   :  { %212 = vsyncpa [#allocation9], 1 }
 0x14f   :  { %213 = vsyncpa [#allocation7], 1 }

</bundles_post_ra>
